<compile_context>
chip_gen: v6e
topology: v6e:2x2x1
jax: 0.10.0
libtpu: 0.0.40
codegen_flags: <defaults>
</compile_context>

<pallas_src>
import numpy as np
import jax
import jax.numpy as jnp
from jax import lax
from jax.experimental import pallas as pl
from jax.experimental.pallas import tpu as pltpu

N, C, H, W = 2, 4, 16, 16
HIDDEN = 8
KS = 3
NH = N * H                      # 32: batch-stacked image rows
KCOL = W * C * KS * KS          # 576: im2col columns, ordered (w, c, kh, kw)
KPAD = 640                      # contraction dim padded to a multiple of 128


def uncertainty_kernel(p_ref, w1_ref, b1_ref, w2_ref, b2_ref,
                       dy_ref, dx_ref, bh3_ref, bw_ref, o_ref):
    f32 = jnp.float32
    # ---------------- detector head (MXU matmuls) ----------------
    # (NH, KPAD) @ (KPAD, HIDDEN*W) -> (NH, HIDDEN*W), bias + ReLU
    h = jnp.dot(p_ref[...], w1_ref[...], preferred_element_type=f32)
    h = jnp.maximum(h + b1_ref[...], 0.0)
    # (NH, HIDDEN*W) @ (HIDDEN*W, W) -> (NH, W) detection heatmap
    heat = jnp.dot(h, w2_ref[...], preferred_element_type=f32) + b2_ref[...]

    # ------------- confidence: structure-tensor min-eigenvalue -------------
    iy = jnp.dot(dy_ref[...], heat, preferred_element_type=f32)   # d/dh (block-diag over batch)
    ix = jnp.dot(heat, dx_ref[...], preferred_element_type=f32)   # d/dw
    # stack the three autocorrelation products along sublanes -> one box pass
    s = jnp.concatenate([ix * ix, iy * iy, ix * iy], axis=0)      # (3*NH, W)
    boxed = jnp.dot(jnp.dot(bh3_ref[...], s, preferred_element_type=f32),
                    bw_ref[...], preferred_element_type=f32)      # (3*NH, W)
    a = boxed[0:NH, :]
    b = boxed[NH:2 * NH, :]
    cc = boxed[2 * NH:3 * NH, :]
    m = 0.5 * (a + b) - jnp.sqrt(jnp.square(0.5 * (a - b)) + jnp.square(cc))
    o_ref[...] = m                                                # (NH, W)


def _structure_mats(h, w):
    dy = np.zeros((h, h), np.float32)
    for i in range(h):
        if i + 1 < h:
            dy[i, i + 1] = 0.5
        if i - 1 >= 0:
            dy[i, i - 1] = -0.5
    dx = np.zeros((w, w), np.float32)
    for j in range(w):
        if j + 1 < w:
            dx[j + 1, j] = 0.5
        if j - 1 >= 0:
            dx[j - 1, j] = -0.5
    bh = np.zeros((h, h), np.float32)
    for i in range(h):
        bh[i, max(0, i - 1):min(h, i + 2)] = 1.0
    bw = np.zeros((w, w), np.float32)
    for l in range(w):
        bw[l, max(0, l - 1):min(w, l + 2)] = 1.0
    return dy, dx, bh, bw


def _kernel_operator_mats():
    dy, dx, bh, bw = _structure_mats(H, W)
    eye_n = np.eye(N, dtype=np.float32)
    dy_bd = np.kron(eye_n, dy)                          # (NH, NH): per-batch d/dh
    bh_bd = np.kron(eye_n, bh)                          # (NH, NH): per-batch box(h)
    bh3 = np.kron(np.eye(3, dtype=np.float32), bh_bd)   # (3*NH, 3*NH) for stacked products
    return (jnp.asarray(dy_bd), jnp.asarray(dx), jnp.asarray(bh3), jnp.asarray(bw))


@jax.jit
def uncertainty_forward(x, w1, b1, w2, b2):
    # ---------------- glue: im2col + weight preprocessing ----------------
    x = x.astype(jnp.float32)
    x_pad = jnp.pad(x, ((0, 0), (0, 0), (1, 1), (1, 1)))
    pats = []
    for kh in range(KS):
        for kw in range(KS):
            pats.append(x_pad[:, :, kh:kh + H, kw:kw + W])        # (N, C, H, W)
    pat = jnp.stack(pats, axis=-1)                                # (N, C, H, W, 9)
    pat = pat.transpose(0, 2, 3, 1, 4)                            # (N, H, W, C, 9)
    p = pat.reshape(NH, KCOL)
    p = jnp.pad(p, ((0, 0), (0, KPAD - KCOL)))                    # (NH, KPAD)

    eye_w = jnp.eye(W, dtype=jnp.float32)
    # expanded conv1 weights: w1mat[(w*C*9 + k), (o*W + v)] = w1[o, k] * delta(w, v)
    w1_ko = w1.astype(jnp.float32).reshape(HIDDEN, C * KS * KS).T          # (C*9, HIDDEN)
    w1mat = jnp.einsum('ko,wv->wkov', w1_ko, eye_w).reshape(KCOL, HIDDEN * W)
    w1mat = jnp.pad(w1mat, ((0, KPAD - KCOL), (0, 0)))                     # (KPAD, HIDDEN*W)
    bias1 = jnp.repeat(b1.astype(jnp.float32), W)[None, :]                 # (1, HIDDEN*W)
    # expanded conv2 (1x1) weights: w2mat[(o*W + w), v] = w2[o] * delta(w, v)
    w2mat = jnp.einsum('o,wv->owv', w2.astype(jnp.float32), eye_w)
    w2mat = w2mat.reshape(HIDDEN * W, W)                                   # (HIDDEN*W, W)
    bias2 = jnp.broadcast_to(b2.astype(jnp.float32).reshape(1, 1), (1, W))

    dy_bd, dx, bh3, bw = _kernel_operator_mats()

    flops = 2 * (NH * KPAD * HIDDEN * W + NH * HIDDEN * W * W
                 + NH * NH * W + NH * W * W
                 + (3 * NH) * (3 * NH) * W + (3 * NH) * W * W)
    bytes_accessed = 4 * (NH * KPAD + KPAD * HIDDEN * W + HIDDEN * W
                          + HIDDEN * W * W + W + NH * NH + W * W
                          + 9 * NH * NH + W * W + NH * W)

    vmem = pltpu.MemorySpace.VMEM
    fn = pl.pallas_call(
        uncertainty_kernel,
        out_shape=jax.ShapeDtypeStruct((NH, W), jnp.float32),
        in_specs=[pl.BlockSpec(memory_space=vmem) for _ in range(9)],
        out_specs=pl.BlockSpec(memory_space=vmem),
        cost_estimate=pl.CostEstimate(flops=flops, transcendentals=NH * W,
                                      bytes_accessed=bytes_accessed),
    )
    out = fn(p, w1mat, bias1, w2mat, bias2, dy_bd, dx, bh3, bw)   # (NH, W)
    return out.reshape(N, 1, H, W)


def reference(x, w1, b1, w2, b2):
    dy, dx, bh, bw = _structure_mats(H, W)
    out1 = lax.conv_general_dilated(
        x, w1, window_strides=(1, 1), padding="SAME",
        dimension_numbers=("NCHW", "OIHW", "NCHW"))
    out1 = jnp.maximum(out1 + b1[None, :, None, None], 0.0)
    heat = jnp.einsum("nohw,o->nhw", out1, w2) + b2[0]
    iy = jnp.einsum("hk,nkw->nhw", dy, heat)
    ix = jnp.einsum("nhk,kw->nhw", heat, dx)

    def box(z):
        return jnp.einsum("hk,nkl,lw->nhw", bh, z, bw)

    a = box(ix * ix)
    b = box(iy * iy)
    cc = box(ix * iy)
    m = 0.5 * (a + b) - jnp.sqrt(jnp.square(0.5 * (a - b)) + jnp.square(cc))
    return m[:, None]


if __name__ == "__main__":
    key = jax.random.PRNGKey(0)
    kx, k1, k2, k3, k4 = jax.random.split(key, 5)
    x = jax.random.normal(kx, (N, C, H, W), jnp.float32)
    w1 = jax.random.normal(k1, (HIDDEN, C, KS, KS), jnp.float32) * 0.2
    b1 = jax.random.normal(k2, (HIDDEN,), jnp.float32) * 0.1
    w2 = jax.random.normal(k3, (HIDDEN,), jnp.float32) * 0.2
    b2 = jax.random.normal(k4, (1,), jnp.float32) * 0.1

    out = jax.block_until_ready(uncertainty_forward(x, w1, b1, w2, b2))
    ref = jax.block_until_ready(reference(x, w1, b1, w2, b2))

    assert out.shape == (N, 1, H, W)
    np.testing.assert_allclose(np.asarray(out), np.asarray(ref),
                               rtol=1e-4, atol=1e-4)
    print("KERNEL_OK")
</pallas_src>

<mosaic_0001>
module attributes {stable_mosaic.version = 11 : i64} {
  func.func @uncertainty_kernel(%arg0: memref<32x640xf32, #tpu.memory_space<vmem>>, %arg1: memref<640x128xf32, #tpu.memory_space<vmem>>, %arg2: memref<1x128xf32, #tpu.memory_space<vmem>>, %arg3: memref<128x16xf32, #tpu.memory_space<vmem>>, %arg4: memref<1x16xf32, #tpu.memory_space<vmem>>, %arg5: memref<32x32xf32, #tpu.memory_space<vmem>>, %arg6: memref<16x16xf32, #tpu.memory_space<vmem>>, %arg7: memref<96x96xf32, #tpu.memory_space<vmem>>, %arg8: memref<16x16xf32, #tpu.memory_space<vmem>>, %arg9: memref<32x16xf32, #tpu.memory_space<vmem>>) attributes {dimension_semantics = [], scalar_prefetch = 0 : i64, scratch_operands = 0 : i64, tpu.core_type = #tpu.core_type<tc>} {
    %c0 = arith.constant 0 : index
    %c0_0 = arith.constant 0 : index
    %0 = vector.load %arg0[%c0, %c0_0] : memref<32x640xf32, #tpu.memory_space<vmem>>, vector<32x640xf32>
    %c0_1 = arith.constant 0 : index
    %c0_2 = arith.constant 0 : index
    %1 = vector.load %arg1[%c0_1, %c0_2] : memref<640x128xf32, #tpu.memory_space<vmem>>, vector<640x128xf32>
    %cst = arith.constant dense<0.000000e+00> : vector<32x128xf32>
    %2 = tpu.matmul %0, %1, %cst {dimension_numbers = #tpu.dot_dimension_numbers<[1], [0], [0], [1], [0, 0, 1, 1], [], []>} : vector<32x640xf32>, vector<640x128xf32>, vector<32x128xf32> -> vector<32x128xf32>
    %c0_3 = arith.constant 0 : index
    %c0_4 = arith.constant 0 : index
    %3 = vector.load %arg2[%c0_3, %c0_4] : memref<1x128xf32, #tpu.memory_space<vmem>>, vector<1x128xf32>
    %4 = vector.broadcast %3 : vector<1x128xf32> to vector<32x128xf32>
    %5 = arith.addf %2, %4 : vector<32x128xf32>
    %cst_5 = arith.constant 0.000000e+00 : f32
    %6 = vector.broadcast %cst_5 : f32 to vector<32x128xf32>
    %7 = arith.maximumf %5, %6 : vector<32x128xf32>
    %c0_6 = arith.constant 0 : index
    %c0_7 = arith.constant 0 : index
    %8 = vector.load %arg3[%c0_6, %c0_7] : memref<128x16xf32, #tpu.memory_space<vmem>>, vector<128x16xf32>
    %cst_8 = arith.constant dense<0.000000e+00> : vector<32x16xf32>
    %9 = tpu.matmul %7, %8, %cst_8 {dimension_numbers = #tpu.dot_dimension_numbers<[1], [0], [0], [1], [0, 0, 1, 1], [], []>} : vector<32x128xf32>, vector<128x16xf32>, vector<32x16xf32> -> vector<32x16xf32>
    %c0_9 = arith.constant 0 : index
    %c0_10 = arith.constant 0 : index
    %10 = vector.load %arg4[%c0_9, %c0_10] : memref<1x16xf32, #tpu.memory_space<vmem>>, vector<1x16xf32>
    %11 = vector.broadcast %10 : vector<1x16xf32> to vector<32x16xf32>
    %12 = arith.addf %9, %11 : vector<32x16xf32>
    %c0_11 = arith.constant 0 : index
    %c0_12 = arith.constant 0 : index
    %13 = vector.load %arg5[%c0_11, %c0_12] : memref<32x32xf32, #tpu.memory_space<vmem>>, vector<32x32xf32>
    %cst_13 = arith.constant dense<0.000000e+00> : vector<32x16xf32>
    %14 = tpu.matmul %13, %12, %cst_13 {dimension_numbers = #tpu.dot_dimension_numbers<[1], [0], [0], [1], [0, 0, 1, 1], [], []>} : vector<32x32xf32>, vector<32x16xf32>, vector<32x16xf32> -> vector<32x16xf32>
    %c0_14 = arith.constant 0 : index
    %c0_15 = arith.constant 0 : index
    %15 = vector.load %arg6[%c0_14, %c0_15] : memref<16x16xf32, #tpu.memory_space<vmem>>, vector<16x16xf32>
    %cst_16 = arith.constant dense<0.000000e+00> : vector<32x16xf32>
    %16 = tpu.matmul %12, %15, %cst_16 {dimension_numbers = #tpu.dot_dimension_numbers<[1], [0], [0], [1], [0, 0, 1, 1], [], []>} : vector<32x16xf32>, vector<16x16xf32>, vector<32x16xf32> -> vector<32x16xf32>
    %17 = arith.mulf %16, %16 : vector<32x16xf32>
    %18 = arith.mulf %14, %14 : vector<32x16xf32>
    %19 = arith.mulf %16, %14 : vector<32x16xf32>
    %20 = tpu.concatenate %17, %18, %19 in 0 : vector<32x16xf32>, vector<32x16xf32>, vector<32x16xf32> -> vector<96x16xf32>
    %c0_17 = arith.constant 0 : index
    %c0_18 = arith.constant 0 : index
    %21 = vector.load %arg7[%c0_17, %c0_18] : memref<96x96xf32, #tpu.memory_space<vmem>>, vector<96x96xf32>
    %cst_19 = arith.constant dense<0.000000e+00> : vector<96x16xf32>
    %22 = tpu.matmul %21, %20, %cst_19 {dimension_numbers = #tpu.dot_dimension_numbers<[1], [0], [0], [1], [0, 0, 1, 1], [], []>} : vector<96x96xf32>, vector<96x16xf32>, vector<96x16xf32> -> vector<96x16xf32>
    %c0_20 = arith.constant 0 : index
    %c0_21 = arith.constant 0 : index
    %23 = vector.load %arg8[%c0_20, %c0_21] : memref<16x16xf32, #tpu.memory_space<vmem>>, vector<16x16xf32>
    %cst_22 = arith.constant dense<0.000000e+00> : vector<96x16xf32>
    %24 = tpu.matmul %22, %23, %cst_22 {dimension_numbers = #tpu.dot_dimension_numbers<[1], [0], [0], [1], [0, 0, 1, 1], [], []>} : vector<96x16xf32>, vector<16x16xf32>, vector<96x16xf32> -> vector<96x16xf32>
    %25 = vector.extract_strided_slice %24 {offsets = [0, 0], sizes = [32, 16], strides = [1, 1]} : vector<96x16xf32> to vector<32x16xf32>
    %26 = vector.extract_strided_slice %24 {offsets = [32, 0], sizes = [32, 16], strides = [1, 1]} : vector<96x16xf32> to vector<32x16xf32>
    %27 = vector.extract_strided_slice %24 {offsets = [64, 0], sizes = [32, 16], strides = [1, 1]} : vector<96x16xf32> to vector<32x16xf32>
    %28 = arith.addf %25, %26 : vector<32x16xf32>
    %cst_23 = arith.constant 5.000000e-01 : f32
    %29 = vector.broadcast %cst_23 : f32 to vector<32x16xf32>
    %30 = arith.mulf %29, %28 : vector<32x16xf32>
    %31 = arith.subf %25, %26 : vector<32x16xf32>
    %cst_24 = arith.constant 5.000000e-01 : f32
    %32 = vector.broadcast %cst_24 : f32 to vector<32x16xf32>
    %33 = arith.mulf %32, %31 : vector<32x16xf32>
    %34 = arith.mulf %33, %33 : vector<32x16xf32>
    %35 = arith.mulf %27, %27 : vector<32x16xf32>
    %36 = arith.addf %34, %35 : vector<32x16xf32>
    %37 = math.sqrt %36 : vector<32x16xf32>
    %38 = arith.subf %30, %37 : vector<32x16xf32>
    %c0_25 = arith.constant 0 : index
    %c0_26 = arith.constant 0 : index
    %39 = vector.load %arg9[%c0_25, %c0_26] : memref<32x16xf32, #tpu.memory_space<vmem>>, vector<32x16xf32>
    tpu.vector_store %arg9[%c0_25, %c0_26], %38 {strides = array<i32>} : memref<32x16xf32, #tpu.memory_space<vmem>>, vector<32x16xf32>,
    return
  }
}

</mosaic_0001>

<bundles_post_ra>
// kernel: uncertainty_forward.1
= control target key start
LH: loop header
LB: loop body
LE: loop exit
PB: predicated region body
PF: predicated region fallthrough
CT: control target
= control target key end

     0   :  { %s2055_s0 = inlined_call_operand.vmem [shape: f32[32,640], index: 0, kind: input, shape index: {}]   ;;  %s2056_s1 = inlined_call_operand.vmem [shape: f32[640,128], index: 1, kind: input, shape index: {}]   ;;  %s2057_s2 = inlined_call_operand.vmem [shape: f32[1,128], index: 2, kind: input, shape index: {}]   ;;  %s2058_s3 = inlined_call_operand.vmem [shape: f32[128,16], index: 3, kind: input, shape index: {}]   ;;  %s2059_s4 = inlined_call_operand.vmem [shape: f32[1,16], index: 4, kind: input, shape index: {}]   ;;  %s2060_s5 = inlined_call_operand.vmem [shape: f32[32,32], index: 5, kind: input, shape index: {}]   ;;  %s2061_s6 = inlined_call_operand.vmem [shape: f32[16,16], index: 6, kind: input, shape index: {}]   ;;  %s2062_s7 = inlined_call_operand.vmem [shape: f32[96,96], index: 7, kind: input, shape index: {}]   ;;  %s2063_s8 = inlined_call_operand.vmem [shape: f32[16,16], index: 8, kind: input, shape index: {}]   ;;  %s2064_s9 = inlined_call_operand.hbm [shape: f32[32,16], index: 9, kind: output, shape index: {}]  }
   0x1   :  { %v84_v0 = vld [vmem:[%s2056_s1 + $0xf8] sm:$0xff]  ;;  %v83_v2 = vld [vmem:[%s2056_s1 + $0xf0] sm:$0xff]  ;;  %v82_v6 = vld [vmem:[%s2056_s1 + $0xe8] sm:$0xff] }
   0x2   :  { %v68_v1 = vld [vmem:[%s2056_s1 + $0x78] sm:$0xff]  ;;  %1172 = vmatprep.subr.mxu0 %v84_v0  ;;  %v67_v4 = vld [vmem:[%s2056_s1 + $0x70] sm:$0xff]  ;;  %v66_v8 = vld [vmem:[%s2056_s1 + $0x68] sm:$0xff] }
   0x3   :  { %v116_v3 = vld [vmem:[%s2056_s1 + $0x1f8] sm:$0xff]  ;;  %1173 = vmatpush3.msra.mxu0 %v68_v1  ;;  %v115_v7 = vld [vmem:[%s2056_s1 + $0x1f0] sm:$0xff]  ;;  %v114_v10 = vld [vmem:[%s2056_s1 + $0x1e8] sm:$0xff] }
   0x4   :  { %v100_v5 = vld [vmem:[%s2056_s1 + $0x178] sm:$0xff]  ;;  %1216 = vmatprep.subr.mxu1 %v116_v3  ;;  %1174 = vmatprep.subr.mxu0 %v83_v2  ;;  %v99_v9 = vld [vmem:[%s2056_s1 + $0x170] sm:$0xff]  ;;  %v81_v11 = vld [vmem:[%s2056_s1 + $0xe0] sm:$0xff] }
   0x5   :  { %1217 = vmatpush3.msra.mxu1 %v100_v5  ;;  %1175 = vmatpush3.msra.mxu0 %v67_v4  ;;  %v98_v12 = vld [vmem:[%s2056_s1 + $0x168] sm:$0xff]  ;;  %v65_v13 = vld [vmem:[%s2056_s1 + $0x60] sm:$0xff]  ;;  %v80_v15 = vld [vmem:[%s2056_s1 + $0xd8] sm:$0xff] }
   0x6   :  { %1218 = vmatprep.subr.mxu1 %v115_v7  ;;  %1176 = vmatprep.subr.mxu0 %v82_v6  ;;  %v113_v14 = vld [vmem:[%s2056_s1 + $0x1e0] sm:$0xff]  ;;  %v64_v17 = vld [vmem:[%s2056_s1 + $0x58] sm:$0xff]  ;;  %v79_v19 = vld [vmem:[%s2056_s1 + $0xd0] sm:$0xff] }
   0x7   :  { %1219 = vmatpush3.msra.mxu1 %v99_v9  ;;  %1177 = vmatpush3.msra.mxu0 %v66_v8  ;;  %v97_v16 = vld [vmem:[%s2056_s1 + $0x160] sm:$0xff]  ;;  %v112_v18 = vld [vmem:[%s2056_s1 + $0x1d8] sm:$0xff]  ;;  %v63_v21 = vld [vmem:[%s2056_s1 + $0x50] sm:$0xff] }
   0x8   :  { %1220 = vmatprep.subr.mxu1 %v114_v10  ;;  %1178 = vmatprep.subr.mxu0 %v81_v11  ;;  %v96_v20 = vld [vmem:[%s2056_s1 + $0x158] sm:$0xff]  ;;  %v111_v22 = vld [vmem:[%s2056_s1 + $0x1d0] sm:$0xff]  ;;  %v78_v23 = vld [vmem:[%s2056_s1 + $0xc8] sm:$0xff] }
   0x9   :  { %1221 = vmatpush3.msra.mxu1 %v98_v12  ;;  %1179 = vmatpush3.msra.mxu0 %v65_v13  ;;  %v95_v24 = vld [vmem:[%s2056_s1 + $0x150] sm:$0xff]  ;;  %v62_v25 = vld [vmem:[%s2056_s1 + $0x48] sm:$0xff]  ;;  %v77_v27 = vld [vmem:[%s2056_s1 + $0xc0] sm:$0xff] }
   0xa   :  { %1222 = vmatprep.subr.mxu1 %v113_v14  ;;  %1180 = vmatprep.subr.mxu0 %v80_v15  ;;  %v110_v26 = vld [vmem:[%s2056_s1 + $0x1c8] sm:$0xff]  ;;  %v61_v29 = vld [vmem:[%s2056_s1 + $0x40] sm:$0xff]  ;;  %v76_v31 = vld [vmem:[%s2056_s1 + $0xb8] sm:$0xff] }
   0xb   :  { %1223 = vmatpush3.msra.mxu1 %v97_v16  ;;  %1181 = vmatpush3.msra.mxu0 %v64_v17  ;;  %v94_v28 = vld [vmem:[%s2056_s1 + $0x148] sm:$0xff]  ;;  %v109_v30 = vld [vmem:[%s2056_s1 + $0x1c0] sm:$0xff]  ;;  %v60_v33 = vld [vmem:[%s2056_s1 + $0x38] sm:$0xff] }
   0xc   :  { %1224 = vmatprep.subr.mxu1 %v112_v18  ;;  %1182 = vmatprep.subr.mxu0 %v79_v19  ;;  %v93_v32 = vld [vmem:[%s2056_s1 + $0x140] sm:$0xff]  ;;  %v108_v34 = vld [vmem:[%s2056_s1 + $0x1b8] sm:$0xff]  ;;  %v75_v35 = vld [vmem:[%s2056_s1 + $0xb0] sm:$0xff] }
   0xd   :  { %1225 = vmatpush3.msra.mxu1 %v96_v20  ;;  %1183 = vmatpush3.msra.mxu0 %v63_v21  ;;  %v92_v36 = vld [vmem:[%s2056_s1 + $0x138] sm:$0xff]  ;;  %v59_v37 = vld [vmem:[%s2056_s1 + $0x30] sm:$0xff]  ;;  %v74_v39 = vld [vmem:[%s2056_s1 + $0xa8] sm:$0xff] }
   0xe   :  { %1226 = vmatprep.subr.mxu1 %v111_v22  ;;  %1184 = vmatprep.subr.mxu0 %v78_v23  ;;  %v107_v38 = vld [vmem:[%s2056_s1 + $0x1b0] sm:$0xff]  ;;  %v58_v41 = vld [vmem:[%s2056_s1 + $0x28] sm:$0xff]  ;;  %v73_v43 = vld [vmem:[%s2056_s1 + $0xa0] sm:$0xff] }
   0xf   :  { %1227 = vmatpush3.msra.mxu1 %v95_v24  ;;  %1185 = vmatpush3.msra.mxu0 %v62_v25  ;;  %v91_v40 = vld [vmem:[%s2056_s1 + $0x130] sm:$0xff]  ;;  %v106_v42 = vld [vmem:[%s2056_s1 + $0x1a8] sm:$0xff]  ;;  %v57_v45 = vld [vmem:[%s2056_s1 + $0x20] sm:$0xff] }
  0x10   :  { %1228 = vmatprep.subr.mxu1 %v110_v26  ;;  %1186 = vmatprep.subr.mxu0 %v77_v27  ;;  %v90_v44 = vld [vmem:[%s2056_s1 + $0x128] sm:$0xff]  ;;  %v105_v46 = vld [vmem:[%s2056_s1 + $0x1a0] sm:$0xff]  ;;  %v72_v47 = vld [vmem:[%s2056_s1 + $0x98] sm:$0xff] }
  0x11   :  { %1229 = vmatpush3.msra.mxu1 %v94_v28  ;;  %1187 = vmatpush3.msra.mxu0 %v61_v29  ;;  %v89_v48 = vld [vmem:[%s2056_s1 + $0x120] sm:$0xff]  ;;  %v56_v49 = vld [vmem:[%s2056_s1 + $0x18] sm:$0xff]  ;;  %v71_v51 = vld [vmem:[%s2056_s1 + $0x90] sm:$0xff] }
  0x12   :  { %1230 = vmatprep.subr.mxu1 %v109_v30  ;;  %1188 = vmatprep.subr.mxu0 %v76_v31  ;;  %v104_v50 = vld [vmem:[%s2056_s1 + $0x198] sm:$0xff]  ;;  %v55_v53 = vld [vmem:[%s2056_s1 + $0x10] sm:$0xff]  ;;  %v70_v55 = vld [vmem:[%s2056_s1 + $0x88] sm:$0xff] }
  0x13   :  { %1231 = vmatpush3.msra.mxu1 %v93_v32  ;;  %1189 = vmatpush3.msra.mxu0 %v60_v33  ;;  %v88_v52 = vld [vmem:[%s2056_s1 + $0x118] sm:$0xff]  ;;  %v103_v54 = vld [vmem:[%s2056_s1 + $0x190] sm:$0xff]  ;;  %v54_v57 = vld [vmem:[%s2056_s1 + $0x8] sm:$0xff] }
  0x14   :  { %1232 = vmatprep.subr.mxu1 %v108_v34  ;;  %1190 = vmatprep.subr.mxu0 %v75_v35  ;;  %v87_v56 = vld [vmem:[%s2056_s1 + $0x110] sm:$0xff]  ;;  %v102_v58 = vld [vmem:[%s2056_s1 + $0x188] sm:$0xff]  ;;  %v69_v59 = vld [vmem:[%s2056_s1 + $0x80] sm:$0xff] }
  0x15   :  { %1233 = vmatpush3.msra.mxu1 %v92_v36  ;;  %1191 = vmatpush3.msra.mxu0 %v59_v37  ;;  %v34_v60 = vld [vmem:[%s2055_s0 + $0x8] sm:$0xff]  ;;  %v53_v61 = vld [vmem:[%s2056_s1] sm:$0xff]  ;;  %v132_v1 = vld [vmem:[%s2056_s1 + $0x278] sm:$0xff] }
  0x16   :  { %1234 = vmatprep.subr.mxu1 %v107_v38  ;;  %1192 = vmatprep.subr.mxu0 %v74_v39  ;;  %v86_v62 = vld [vmem:[%s2056_s1 + $0x108] sm:$0xff]  ;;  %v33_v63 = vld [vmem:[%s2055_s0] sm:$0xff]  ;;  %v36_v3 = vld [vmem:[%s2055_s0 + $0x18] sm:$0xff] }
  0x17   :  { %1235 = vmatpush3.msra.mxu1 %v91_v40  ;;  %1193 = vmatpush3.msra.mxu0 %v58_v41  ;;  %v101_v0 = vld [vmem:[%s2056_s1 + $0x180] sm:$0xff]  ;;  %v35_v4 = vld [vmem:[%s2055_s0 + $0x10] sm:$0xff] }
  0x18   :  { %1236 = vmatprep.subr.mxu1 %v106_v42  ;;  %1194 = vmatprep.subr.mxu0 %v73_v43  ;;  %v85_v2 = vld [vmem:[%s2056_s1 + $0x100] sm:$0xff]  ;;  %v131_v5 = vld [vmem:[%s2056_s1 + $0x270] sm:$0xff] }
  0x19   :  { %1237 = vmatpush3.msra.mxu1 %v90_v44  ;;  %1195 = vmatpush3.msra.mxu0 %v57_v45 }
  0x1a   :  { %1238 = vmatprep.subr.mxu1 %v105_v46  ;;  %1196 = vmatprep.subr.mxu0 %v72_v47 }
  0x1b   :  { %1239 = vmatpush3.msra.mxu1 %v89_v48  ;;  %1197 = vmatpush3.msra.mxu0 %v56_v49 }
  0x1c   :  { %1240 = vmatprep.subr.mxu1 %v104_v50  ;;  %1198 = vmatprep.subr.mxu0 %v71_v51 }
  0x1d   :  { %1241 = vmatpush3.msra.mxu1 %v88_v52  ;;  %1199 = vmatpush3.msra.mxu0 %v55_v53 }
  0x1e   :  { %1242 = vmatprep.subr.mxu1 %v103_v54  ;;  %1200 = vmatprep.subr.mxu0 %v70_v55 }
  0x1f   :  { %1243 = vmatpush3.msra.mxu1 %v87_v56  ;;  %1201 = vmatpush3.msra.mxu0 %v54_v57 }
  0x20   :  { %1244 = vmatprep.subr.mxu1 %v102_v58  ;;  %1202 = vmatprep.subr.mxu0 %v69_v59 }
  0x21   :  { %204 = vmatprep.mubr.f32.mxu0 %v34_v60  ;;  %1203 = vmatpush3.msra.mxu0 %v53_v61 }
  0x22   :  { %1245 = vmatpush3.msra.mxu1 %v86_v62  ;;  %205 = vmatmul.mubr.f32.vlgmr.msra.gmra.mxu0 %v33_v63 }
  0x23   :  { %1246 = vmatprep.subr.mxu1 %v101_v0 }
  0x24   :  { %14 = vsyncpa [#allocation3], 0  ;;  %1352 = vmatprep.subr.mxu0 %v132_v1  ;;  %1247 = vmatpush3.msra.mxu1 %v85_v2  ;;  %v39_v6 = vld [vmem:[%s2055_s0 + $0x30] sm:$0xff]  ;;  %v130_v7 = vld [vmem:[%s2056_s1 + $0x268] sm:$0xff]  ;;  %vm511_vm0 = vcmask 261120   ;;  %vm611_vm1 = vcmask 130048  }
  0x25   :  { %289 = vmatprep.mubr.f32.mxu1 %v36_v3  ;;  %1353 = vmatpush3.msra.mxu0 %v132_v1  ;;  %v38_v8 = vld [vmem:[%s2055_s0 + $0x28] sm:$0xff]  ;;  %v41_v9 = vld [vmem:[%s2055_s0 + $0x40] sm:$0xff]  ;;  %v40_v11 = vld [vmem:[%s2055_s0 + $0x38] sm:$0xff]  ;;  %vm733_vm2 = vcmask 785408  }
  0x26   :  { %290 = vmatmul.mubr.f32.vlgmr.msra.gmra.mxu1 %v35_v4  ;;  %1354 = vmatprep.subr.mxu0 %v131_v5  ;;  %v129_v10 = vld [vmem:[%s2056_s1 + $0x260] sm:$0xff]  ;;  %v44_v12 = vld [vmem:[%s2055_s0 + $0x58] sm:$0xff]  ;;  %v43_v14 = vld [vmem:[%s2055_s0 + $0x50] sm:$0xff] }
  0x27   :  { %1355 = vmatpush3.msra.mxu0 %v131_v5  ;;  %209 = vmatprep.mubr.f32.mxu0 %v39_v6  ;;  %v128_v13 = vld [vmem:[%s2056_s1 + $0x258] sm:$0xff]  ;;  %v46_v15 = vld [vmem:[%s2055_s0 + $0x68] sm:$0xff]  ;;  %v127_v16 = vld [vmem:[%s2056_s1 + $0x250] sm:$0xff] }
  0x28   :  { %1356 = vmatprep.subr.mxu0 %v130_v7  ;;  %210 = vmatmul.mubr.f32.gmra.mxu0 %v38_v8  ;;  %v45_v17 = vld [vmem:[%s2055_s0 + $0x60] sm:$0xff]  ;;  %v126_v19 = vld [vmem:[%s2056_s1 + $0x248] sm:$0xff]  ;;  %v48_v20 = vld [vmem:[%s2055_s0 + $0x78] sm:$0xff] }
  0x29   :  { %1357 = vmatpush3.msra.mxu0 %v130_v7  ;;  %294 = vmatprep.mubr.f32.mxu1 %v41_v9  ;;  %v49_v18 = vld [vmem:[%s2055_s0 + $0x80] sm:$0xff]  ;;  %v51_v21 = vld [vmem:[%s2055_s0 + $0x90] sm:$0xff]  ;;  %v50_v23 = vld [vmem:[%s2055_s0 + $0x88] sm:$0xff] }
  0x2a   :  { %1358 = vmatprep.subr.mxu0 %v129_v10  ;;  %295 = vmatmul.mubr.f32.gmra.mxu1 %v40_v11  ;;  %v125_v22 = vld [vmem:[%s2056_s1 + $0x240] sm:$0xff]  ;;  %v124_v25 = vld [vmem:[%s2056_s1 + $0x238] sm:$0xff]  ;;  %v123_v26 = vld [vmem:[%s2056_s1 + $0x230] sm:$0xff] }
  0x2b   :  { %1359 = vmatpush3.msra.mxu0 %v129_v10  ;;  %214 = vmatprep.mubr.f32.mxu0 %v44_v12  ;;  %v37_v24 = vld [vmem:[%s2055_s0 + $0x20] sm:$0xff]  ;;  %v122_v27 = vld [vmem:[%s2056_s1 + $0x228] sm:$0xff]  ;;  %v120_v29 = vld [vmem:[%s2056_s1 + $0x218] sm:$0xff] }
  0x2c   :  { %1360 = vmatprep.subr.mxu0 %v128_v13  ;;  %215 = vmatmul.mubr.f32.gmra.mxu0 %v43_v14  ;;  %v121_v28 = vld [vmem:[%s2056_s1 + $0x220] sm:$0xff]  ;;  %v119_v30 = vld [vmem:[%s2056_s1 + $0x210] sm:$0xff]  ;;  %v118_v31 = vld [vmem:[%s2056_s1 + $0x208] sm:$0xff] }
  0x2d   :  { %1361 = vmatpush3.msra.mxu0 %v128_v13  ;;  %299 = vmatprep.mubr.f32.mxu1 %v46_v15  ;;  %v117_v32 = vld [vmem:[%s2056_s1 + $0x200] sm:$0xff]  ;;  %v42_v33 = vld [vmem:[%s2055_s0 + $0x48] sm:$0xff]  ;;  %v47_v34 = vld [vmem:[%s2055_s0 + $0x70] sm:$0xff] }
  0x2e   :  { %1362 = vmatprep.subr.mxu0 %v127_v16  ;;  %300 = vmatmul.mubr.f32.gmra.mxu1 %v45_v17  ;;  %v52_v35 = vld [vmem:[%s2055_s0 + $0x98] sm:$0xff]  ;;  %v413_v37 = vld [vmem:[%s2058_s3 + $0x70] sm:$0xff]  ;;  %v412_v38 = vld [vmem:[%s2058_s3 + $0x68] sm:$0xff] }
  0x2f   :  { %1363 = vmatpush3.msra.mxu0 %v127_v16  ;;  %219 = vmatprep.mubr.f32.mxu0 %v49_v18  ;;  %v414_v36 = vld [vmem:[%s2058_s3 + $0x78] sm:$0xff]  ;;  %v411_v39 = vld [vmem:[%s2058_s3 + $0x60] sm:$0xff]  ;;  %v409_v41 = vld [vmem:[%s2058_s3 + $0x50] sm:$0xff] }
  0x30   :  { %1364 = vmatprep.subr.mxu0 %v126_v19  ;;  %220 = vmatmul.mubr.f32.gmra.mxu0 %v48_v20  ;;  %v410_v40 = vld [vmem:[%s2058_s3 + $0x58] sm:$0xff]  ;;  %v408_v42 = vld [vmem:[%s2058_s3 + $0x48] sm:$0xff]  ;;  %v407_v43 = vld [vmem:[%s2058_s3 + $0x40] sm:$0xff] }
  0x31   :  { %1365 = vmatpush3.msra.mxu0 %v126_v19  ;;  %304 = vmatprep.mubr.f32.mxu1 %v51_v21  ;;  %v406_v44 = vld [vmem:[%s2058_s3 + $0x38] sm:$0xff]  ;;  %v405_v45 = vld [vmem:[%s2058_s3 + $0x30] sm:$0xff]  ;;  %v404_v46 = vld [vmem:[%s2058_s3 + $0x28] sm:$0xff] }
  0x32   :  { %1366 = vmatprep.subr.mxu0 %v125_v22  ;;  %305 = vmatmul.mubr.f32.gmra.mxu1 %v50_v23  ;;  %v403_v47 = vld [vmem:[%s2058_s3 + $0x20] sm:$0xff]  ;;  %v402_v48 = vld [vmem:[%s2058_s3 + $0x18] sm:$0xff]  ;;  %v401_v49 = vld [vmem:[%s2058_s3 + $0x10] sm:$0xff] }
  0x33   :  { %1367 = vmatpush3.msra.mxu0 %v125_v22  ;;  %1384 = vmatprep.mubr.f32.mxu0 %v37_v24  ;;  %v400_v50 = vld [vmem:[%s2058_s3 + $0x8] sm:$0xff]  ;;  %v399_v51 = vld [vmem:[%s2058_s3] sm:$0xff] }
  0x34   :  { %1368 = vmatprep.subr.mxu0 %v124_v25  ;;  %1390 = vmatprep.subr.mxu1 %v414_v36  ;;  %v1138_v5 = vld [vmem:[%s2057_s2] ss:$0 sm:$0xff] }
  0x35   :  { %1369 = vmatpush3.msra.mxu0 %v124_v25  ;;  %1391 = vmatpush3.msra.mxu1 %v414_v36  ;;  %v1139_v36 = vld [vmem:[%s2059_s4] ss:$0 sm:$0xff] }
  0x36   :  { %1370 = vmatprep.subr.mxu0 %v123_v26  ;;  %1392 = vmatprep.subr.mxu1 %v413_v37 }
  0x37   :  { %1371 = vmatpush3.msra.mxu0 %v123_v26  ;;  %1393 = vmatpush3.msra.mxu1 %v413_v37 }
  0x38   :  { %1372 = vmatprep.subr.mxu0 %v122_v27  ;;  %1394 = vmatprep.subr.mxu1 %v412_v38 }
  0x39   :  { %1373 = vmatpush3.msra.mxu0 %v122_v27  ;;  %1395 = vmatpush3.msra.mxu1 %v412_v38 }
  0x3a   :  { %1374 = vmatprep.subr.mxu0 %v121_v28  ;;  %1396 = vmatprep.subr.mxu1 %v411_v39 }
  0x3b   :  { %1375 = vmatpush3.msra.mxu0 %v121_v28  ;;  %1397 = vmatpush3.msra.mxu1 %v411_v39 }
  0x3c   :  { %1376 = vmatprep.subr.mxu0 %v120_v29  ;;  %1398 = vmatprep.subr.mxu1 %v410_v40 }
  0x3d   :  { %1377 = vmatpush3.msra.mxu0 %v120_v29  ;;  %1399 = vmatpush3.msra.mxu1 %v410_v40 }
  0x3e   :  { %1378 = vmatprep.subr.mxu0 %v119_v30  ;;  %1400 = vmatprep.subr.mxu1 %v409_v41 }
  0x3f   :  { %1379 = vmatpush3.msra.mxu0 %v119_v30  ;;  %1401 = vmatpush3.msra.mxu1 %v409_v41 }
  0x40   :  { %1380 = vmatprep.subr.mxu0 %v118_v31  ;;  %1402 = vmatprep.subr.mxu1 %v408_v42 }
  0x41   :  { %1381 = vmatpush3.msra.mxu0 %v118_v31  ;;  %1403 = vmatpush3.msra.mxu1 %v408_v42 }
  0x42   :  { %1382 = vmatprep.subr.mxu0 %v117_v32  ;;  %1404 = vmatprep.subr.mxu1 %v407_v43 }
  0x43   :  { %1383 = vmatpush3.msra.mxu0 %v117_v32  ;;  %1405 = vmatpush3.msra.mxu1 %v407_v43  ;;  %v508_v43 = vld [vmem:[%s2060_s5 + $0x8] sm:$0xff] }
  0x44   :  { %1385 = vmatmul.mubr.f32.vlgmr.msra.gmra.mxu0 %v42_v33  ;;  %1406 = vmatprep.subr.mxu1 %v406_v44  ;;  %v507_v33 = vld [vmem:[%s2060_s5] sm:$0xff] }
  0x45   :  { %1387 = vmatprep.mubr.f32.mxu0 %v47_v34  ;;  %1407 = vmatpush3.msra.mxu1 %v406_v44  ;;  %v610_v44 = vld [vmem:[%s2061_s6 + $0x8] sm:$0xff] }
  0x46   :  { %1408 = vmatprep.subr.mxu1 %v405_v45 }
  0x47   :  { %1409 = vmatpush3.msra.mxu1 %v405_v45  ;;  %v509_v45 = vld [vmem:[%s2060_s5 + $0x10] sm:$0xff] }
  0x48   :  { %1388 = vmatmul.mubr.f32.gmra.mxu0 %v52_v35  ;;  %1410 = vmatprep.subr.mxu1 %v404_v46 }
  0x49   :  { %1411 = vmatpush3.msra.mxu1 %v404_v46  ;;  %v609_v46 = vld [vmem:[%s2061_s6] sm:$0xff] }
  0x4a   :  { %1412 = vmatprep.subr.mxu1 %v403_v47 }
  0x4b   :  { %1413 = vmatpush3.msra.mxu1 %v403_v47  ;;  %v510_v47 = vld [vmem:[%s2060_s5 + $0x18] sm:$0xff] }
  0x4c   :  { %1414 = vmatprep.subr.mxu1 %v402_v48 }
  0x4d   :  { %1415 = vmatpush3.msra.mxu1 %v402_v48  ;;  %v721_v48 = vld [vmem:[%s2062_s7] sm:$0xff] }
  0x4e   :  { %1416 = vmatprep.subr.mxu1 %v401_v49  ;;  %1476 = vmatprep.mubr.msk.f32.mxu0 %vm733_vm2, %v721_v48 }
  0x4f   :  { %1417 = vmatpush3.msra.mxu1 %v401_v49  ;;  %v896_v49 = vld [vmem:[%s2063_s8 + $0x8] sm:$0xff] }
  0x50   :  { %1418 = vmatprep.subr.mxu1 %v400_v50 }
  0x51   :  { %1419 = vmatpush3.msra.mxu1 %v400_v50 }
  0x52   :  { %1420 = vmatprep.subr.mxu1 %v399_v51 }
  0x53   :  { %1421 = vmatpush3.msra.mxu1 %v399_v51 }
  0xe2   :  { %v1204_v52 = vpop.f32.mrf.mxu0 }
  0xe4   :  { %v1205_v53 = vpop.f32.mrf.mxu0 }
  0xe5   :  { %v1206_v2 = vadd.f32 %v1205_v53, %v1204_v52 }
  0xe6   :  { %v1248_v54 = vpop.f32.mrf.mxu1 }
  0xe7   :  { %v207_v9 = vadd.f32 %v1206_v2, %v1138_v5 }
  0xe8   :  { %v1207_v55 = vpop.f32.mrf.mxu0  ;;  %v1249_v56 = vpop.f32.mrf.mxu1 }
  0xe9   :  { %v1250_v10 = vadd.f32 %v1249_v56, %v1248_v54 }
  0xea   :  { %v1208_v57 = vpop.f32.mrf.mxu0  ;;  %v1251_v58 = vpop.f32.mrf.mxu1 }
  0xeb   :  { %v1209_v1 = vadd.f32 %v1208_v57, %v1207_v55  ;;  %v292_v19 = vadd.f32 %v1250_v10, %v207_v9  ;;  %v725_v9 = vld [vmem:[%s2062_s7 + $0x20] sm:$0xff]  ;;  %v726_v10 = vld [vmem:[%s2062_s7 + $0x28] sm:$0xff] }
  0xec   :  { %v1210_v59 = vpop.f32.mrf.mxu0  ;;  %v1252_v60 = vpop.f32.mrf.mxu1 }
  0xed   :  { %v212_v6 = vadd.f32 %v1209_v1, %v1138_v5  ;;  %v1253_v7 = vadd.f32 %v1252_v60, %v1251_v58 }
  0xee   :  { %v1211_v61 = vpop.f32.mrf.mxu0  ;;  %v1254_v62 = vpop.f32.mrf.mxu1 }
  0xef   :  { %v1212_v11 = vadd.f32 %v1211_v61, %v1210_v59  ;;  %v297_v15 = vadd.f32 %v1253_v7, %v212_v6  ;;  %v722_v6 = vld [vmem:[%s2062_s7 + $0x8] sm:$0xff]  ;;  %v723_v7 = vld [vmem:[%s2062_s7 + $0x10] sm:$0xff] }
  0xf0   :  { %v1213_v63 = vpop.f32.mrf.mxu0  ;;  %v1255_v0 = vpop.f32.mrf.mxu1 }
  0xf1   :  { %v217_v17 = vadd.f32 %v1212_v11, %v1138_v5  ;;  %v1256_v18 = vadd.f32 %v1255_v0, %v1254_v62  ;;  %v727_v11 = vld [vmem:[%s2062_s7 + $0x30] sm:$0xff] }
  0xf2   :  { %v1214_v3 = vpop.f32.mrf.mxu0  ;;  %v1257_v4 = vpop.f32.mrf.mxu1 }
  0xf3   :  { %v1215_v8 = vadd.f32 %v1214_v3, %v1213_v63  ;;  %v302_v26 = vadd.f32 %v1256_v18, %v217_v17  ;;  %v895_v17 = vld [vmem:[%s2063_s8] sm:$0xff] }
  0xf4   :  { %v1258_v12 = vpop.f32.mrf.mxu1 }
  0xf5   :  { %v222_v13 = vadd.f32 %v1215_v8, %v1138_v5  ;;  %v1259_v14 = vadd.f32 %v1258_v12, %v1257_v4  ;;  %v724_v8 = vld [vmem:[%s2062_s7 + $0x18] sm:$0xff] }
  0xf6   :  { %v728_v12 = vld [vmem:[%s2062_s7 + $0x38] sm:$0xff] }
  0xf7   :  { %v307_v23 = vadd.f32 %v1259_v14, %v222_v13  ;;  %v729_v13 = vld [vmem:[%s2062_s7 + $0x40] sm:$0xff]  ;;  %v730_v14 = vld [vmem:[%s2062_s7 + $0x48] sm:$0xff] }
 0x104   :  { %v1386_v16 = vpop.f32.mrf.mxu0 }
 0x105   :  { %v382_v20 = vadd.f32 %v1386_v16, %v297_v15  ;;  %v731_v15 = vld [vmem:[%s2062_s7 + $0x50] sm:$0xff]  ;;  %v732_v16 = vld [vmem:[%s2062_s7 + $0x58] sm:$0xff]  ;;  %s1549_s7 = smov [#allocation2]  }
 0x106   :  { %v376_v21 = vpop.f32.mrf.mxu0  ;;  %s1127_s8 = sshll.u32 %s1549_s7, 4  ;;  %s1128_s8 = int_to_ptr.vmem [resolvable:$true] %s1127_s8 }
 0x107   :  { %v377_v22 = vadd.f32 %v376_v21, %v292_v19  ;;  %v396_v27 = vmax.f32 %v382_v20, 0.0  ;;  %s1527_s6 = scalar_lea.vmem %s1128_s8, 512  ;;  %p1532_p1 = scmp.lt.s32.totalorder %s1128_s8, %s1128_s8 }
 0x108   :  { %v1389_v24 = vpop.f32.mrf.mxu0  ;;  %p1528_p0 = scmp.ne.s32.totalorder %s1128_s8, %s1527_s6  ;;  %p1533_p2 = scmp.lt.s32.totalorder %s1527_s6, %s1527_s6 }
 0x109   :  { %v395_v25 = vmax.f32 %v377_v22, 0.0  ;;  %v392_v28 = vadd.f32 %v1389_v24, %v307_v23 }
 0x10a   :  { %v386_v29 = vpop.f32.mrf.mxu0  ;;  %p1534_p3 = por %p1533_p2, %p1532_p1 }
 0x10b   :  { %v387_v30 = vadd.f32 %v386_v29, %v302_v26  ;;  %1422 = vmatprep.mubr.f32.mxu1 %v395_v25  ;;  %v398_v32 = vmax.f32 %v392_v28, 0.0 }
 0x10c   :  { %1423 = vmatmul.mubr.f32.vlgmr.msra.gmra.mxu1 %v396_v27  ;;  %p1535_p4 = pnand %p1534_p3, %p1528_p0 }
 0x10d   :  { %v397_v31 = vmax.f32 %v387_v30, 0.0 }
 0x10f   :  { %1425 = vmatprep.mubr.f32.mxu1 %v397_v31 }
 0x110   :  { %1426 = vmatmul.mubr.f32.gmra.mxu1 %v398_v32 }
 0x111   :  { %1436 = vmatprep.mubr.msk.f32.mxu1 %vm511_vm0, %v507_v33 }
 0x1cc   :  { %v1424_v34 = vpop.f32.mrf.mxu1 }
 0x1cd   :  { %v494_v41 = vadd.f32 %v1424_v34, %v1139_v36 }
 0x1ce   :  { %v488_v35 = vpop.f32.mrf.mxu1 }
 0x1cf   :  { %v489_v42 = vadd.f32 %v1139_v36, %v488_v35 }
 0x1d0   :  { %v1427_v37 = vpop.f32.mrf.mxu1 }
 0x1d1   :  { %v504_v38 = vadd.f32 %v1427_v37, %v1139_v36 }
 0x1d2   :  { %v498_v39 = vpop.f32.mrf.mxu1 }
 0x1d3   :  { %v499_v40 = vadd.f32 %v1139_v36, %v498_v39  ;;  %1428 = vmatprep.subr.mxu1 %v504_v38 }
 0x1d4   :  { %1429 = vmatpush3.msra.mxu1 %v504_v38 }
 0x1d5   :  { %1430 = vmatprep.subr.mxu1 %v499_v40 }
 0x1d6   :  { %1431 = vmatpush3.msra.mxu1 %v499_v40 }
 0x1d7   :  { %1432 = vmatprep.subr.mxu1 %v494_v41 }
 0x1d8   :  { %1433 = vmatpush3.msra.mxu1 %v494_v41 }
 0x1d9   :  { %1434 = vmatprep.subr.mxu1 %v489_v42 }
 0x1da   :  { %1435 = vmatpush3.msra.mxu1 %v489_v42 }
 0x1db   :  { %1437 = vmatmul.mubr.msk.f32.vlgmr.msra.gmra.mxu1 %vm511_vm0, %v508_v43  ;;  %1442 = vmatprep.subr.mxu1 %v610_v44 }
 0x1dc   :  { %1443 = vmatpush3.msra.mxu1 %v610_v44  ;;  %1439 = vmatprep.mubr.msk.f32.mxu1 %vm511_vm0, %v509_v45 }
 0x1dd   :  { %1444 = vmatprep.subr.mxu1 %v609_v46 }
 0x1de   :  { %1445 = vmatpush3.msra.mxu1 %v609_v46 }
 0x1df   :  { %1440 = vmatmul.mubr.msk.f32.gmra.mxu1 %vm511_vm0, %v510_v47  ;;  %1494 = vmatprep.subr.mxu1 %v896_v49 }
 0x1e0   :  { %1446 = vmatprep.mubr.msk.f32.mxu1 %vm611_vm1, %v489_v42 }
 0x1e3   :  { %1447 = vmatmul.mubr.msk.f32.vlgmr.msra.gmra.mxu1 %vm611_vm1, %v494_v41 }
 0x1e4   :  { %1449 = vmatprep.mubr.msk.f32.mxu1 %vm611_vm1, %v499_v40  ;;  %1495 = vmatpush3.msra.mxu1 %v896_v49 }
 0x1e5   :  { %1496 = vmatprep.subr.mxu1 %v895_v17 }
 0x1e6   :  { %1497 = vmatpush3.msra.mxu1 %v895_v17 }
 0x1e7   :  { %1450 = vmatmul.mubr.msk.f32.gmra.mxu1 %vm611_vm1, %v504_v38 }
 0x29b   :  { %v1438_v50 = vpop.f32.mrf.mxu1 }
 0x29c   :  { %v714_v0 = vmul.f32 %v1438_v50, %v1438_v50 }
 0x29d   :  { %v590_v51 = vpop.f32.mrf.mxu1 }
 0x29e   :  { %v713_v1 = vmul.f32 %v590_v51, %v590_v51 }
 0x29f   :  { %v1441_v52 = vpop.f32.mrf.mxu1 }
 0x2a0   :  { %v716_v62 = vmul.f32 %v1441_v52, %v1441_v52 }
 0x2a1   :  { %v600_v53 = vpop.f32.mrf.mxu1 }
 0x2a2   :  { %v715_v63 = vmul.f32 %v600_v53, %v600_v53 }
 0x2a3   :  { %v1448_v54 = vpop.f32.mrf.mxu1 }
 0x2a4   :  { %v718_v60 = vmul.f32 %v1448_v54, %v1438_v50  ;;  %v710_v4 = vmul.f32 %v1448_v54, %v1448_v54 }
 0x2a5   :  { %v690_v55 = vpop.f32.mrf.mxu1 }
 0x2a6   :  { %v717_v61 = vmul.f32 %v690_v55, %v590_v51  ;;  %v709_v5 = vmul.f32 %v690_v55, %v690_v55 }
 0x2a7   :  { %v1451_v56 = vpop.f32.mrf.mxu1 }
 0x2a8   :  { %v720_v57 = vmul.f32 %v1451_v56, %v1441_v52  ;;  %v712_v2 = vmul.f32 %v1451_v56, %v1451_v56 }
 0x2a9   :  { %v700_v58 = vpop.f32.mrf.mxu1 }
 0x2aa   :  { %v719_v59 = vmul.f32 %v700_v58, %v600_v53  ;;  %1452 = vmatprep.subr.mxu0 %v720_v57  ;;  %v711_v3 = vmul.f32 %v700_v58, %v700_v58 }
 0x2ab   :  { %1453 = vmatpush3.msra.mxu0 %v720_v57 }
 0x2ac   :  { %1454 = vmatprep.subr.mxu0 %v719_v59 }
 0x2ad   :  { %1455 = vmatpush3.msra.mxu0 %v719_v59 }
 0x2ae   :  { %1456 = vmatprep.subr.mxu0 %v718_v60 }
 0x2af   :  { %1457 = vmatpush3.msra.mxu0 %v718_v60 }
 0x2b0   :  { %1458 = vmatprep.subr.mxu0 %v717_v61 }
 0x2b1   :  { %1459 = vmatpush3.msra.mxu0 %v717_v61 }
 0x2b2   :  { %1460 = vmatprep.subr.mxu0 %v716_v62 }
 0x2b3   :  { %1461 = vmatpush3.msra.mxu0 %v716_v62 }
 0x2b4   :  { %1462 = vmatprep.subr.mxu0 %v715_v63 }
 0x2b5   :  { %1463 = vmatpush3.msra.mxu0 %v715_v63 }
 0x2b6   :  { %1464 = vmatprep.subr.mxu0 %v714_v0 }
 0x2b7   :  { %1465 = vmatpush3.msra.mxu0 %v714_v0 }
 0x2b8   :  { %1466 = vmatprep.subr.mxu0 %v713_v1 }
 0x2b9   :  { %1467 = vmatpush3.msra.mxu0 %v713_v1 }
 0x2ba   :  { %1468 = vmatprep.subr.mxu0 %v712_v2 }
 0x2bb   :  { %1469 = vmatpush3.msra.mxu0 %v712_v2 }
 0x2bc   :  { %1470 = vmatprep.subr.mxu0 %v711_v3 }
 0x2bd   :  { %1471 = vmatpush3.msra.mxu0 %v711_v3 }
 0x2be   :  { %1472 = vmatprep.subr.mxu0 %v710_v4 }
 0x2bf   :  { %1473 = vmatpush3.msra.mxu0 %v710_v4 }
 0x2c0   :  { %1474 = vmatprep.subr.mxu0 %v709_v5 }
 0x2c1   :  { %1475 = vmatpush3.msra.mxu0 %v709_v5 }
 0x2c2   :  { %1477 = vmatmul.mubr.msk.f32.vlgmr.msra.gmra.mxu0 %vm733_vm2, %v722_v6 }
 0x2c3   :  { %1479 = vmatprep.mubr.msk.f32.mxu0 %vm733_vm2, %v723_v7 }
 0x2c6   :  { %1480 = vmatmul.mubr.msk.f32.gmra.mxu0 %vm733_vm2, %v724_v8 }
 0x2c7   :  { %1482 = vmatprep.mubr.msk.f32.mxu0 %vm733_vm2, %v725_v9 }
 0x2ca   :  { %1483 = vmatmul.mubr.msk.f32.gmra.mxu0 %vm733_vm2, %v726_v10 }
 0x2cb   :  { %1485 = vmatprep.mubr.msk.f32.mxu0 %vm733_vm2, %v727_v11 }
 0x2ce   :  { %1486 = vmatmul.mubr.msk.f32.gmra.mxu0 %vm733_vm2, %v728_v12 }
 0x2cf   :  { %1488 = vmatprep.mubr.msk.f32.mxu0 %vm733_vm2, %v729_v13 }
 0x2d2   :  { %1489 = vmatmul.mubr.msk.f32.gmra.mxu0 %vm733_vm2, %v730_v14 }
 0x2d3   :  { %1491 = vmatprep.mubr.msk.f32.mxu0 %vm733_vm2, %v731_v15 }
 0x2d6   :  { %1492 = vmatmul.mubr.msk.f32.gmra.mxu0 %vm733_vm2, %v732_v16 }
 0x382   :  { %v1478_v18 = vpop.f32.mrf.mxu0 }
 0x384   :  { %v836_v19 = vpop.f32.mrf.mxu0 }
 0x385   :  { %1498 = vmatprep.mubr.msk.f32.mxu1 %vm611_vm1, %v836_v19 }
 0x386   :  { %v1481_v20 = vpop.f32.mrf.mxu0  ;;  %1499 = vmatmul.mubr.msk.f32.vlgmr.msra.gmra.mxu1 %vm611_vm1, %v1478_v18 }
 0x388   :  { %v846_v21 = vpop.f32.mrf.mxu0 }
 0x389   :  { %1501 = vmatprep.mubr.msk.f32.mxu1 %vm611_vm1, %v846_v21 }
 0x38a   :  { %v1484_v22 = vpop.f32.mrf.mxu0  ;;  %1502 = vmatmul.mubr.msk.f32.gmra.mxu1 %vm611_vm1, %v1481_v20 }
 0x38c   :  { %v856_v23 = vpop.f32.mrf.mxu0 }
 0x38d   :  { %1504 = vmatprep.mubr.msk.f32.mxu1 %vm611_vm1, %v856_v23 }
 0x38e   :  { %v1487_v24 = vpop.f32.mrf.mxu0  ;;  %1505 = vmatmul.mubr.msk.f32.gmra.mxu1 %vm611_vm1, %v1484_v22 }
 0x390   :  { %v866_v25 = vpop.f32.mrf.mxu0 }
 0x391   :  { %1507 = vmatprep.mubr.msk.f32.mxu1 %vm611_vm1, %v866_v25 }
 0x392   :  { %v1490_v26 = vpop.f32.mrf.mxu0  ;;  %1508 = vmatmul.mubr.msk.f32.gmra.mxu1 %vm611_vm1, %v1487_v24 }
 0x394   :  { %v876_v27 = vpop.f32.mrf.mxu0 }
 0x395   :  { %1510 = vmatprep.mubr.msk.f32.mxu1 %vm611_vm1, %v876_v27 }
 0x396   :  { %v1493_v28 = vpop.f32.mrf.mxu0  ;;  %1511 = vmatmul.mubr.msk.f32.gmra.mxu1 %vm611_vm1, %v1490_v26 }
 0x398   :  { %v886_v29 = vpop.f32.mrf.mxu0 }
 0x399   :  { %1513 = vmatprep.mubr.msk.f32.mxu1 %vm611_vm1, %v886_v29 }
 0x39a   :  { %1514 = vmatmul.mubr.msk.f32.gmra.mxu1 %vm611_vm1, %v1493_v28 }
 0x446   :  { %v1500_v30 = vpop.f32.mrf.mxu1 }
 0x448   :  { %v999_v31 = vpop.f32.mrf.mxu1 }
 0x44a   :  { %v1503_v32 = vpop.f32.mrf.mxu1 }
 0x44c   :  { %v1009_v33 = vpop.f32.mrf.mxu1 }
 0x44e   :  { %v1506_v34 = vpop.f32.mrf.mxu1 }
 0x44f   :  { %v1067_v35 = vsub.f32 %v1500_v30, %v1506_v34  ;;  %v1059_v62 = vadd.f32 %v1506_v34, %v1500_v30 }
 0x450   :  { %v1019_v36 = vpop.f32.mrf.mxu1 }
 0x451   :  { %v1066_v37 = vsub.f32 %v999_v31, %v1019_v36  ;;  %v1071_v39 = vmul.f32 0.5, %v1067_v35  ;;  %v1058_v1 = vadd.f32 %v1019_v36, %v999_v31  ;;  %v1063_v4 = vmul.f32 0.5, %v1059_v62 }
 0x452   :  { %v1509_v38 = vpop.f32.mrf.mxu1 }
 0x453   :  { %v1069_v41 = vsub.f32 %v1503_v32, %v1509_v38  ;;  %v1070_v43 = vmul.f32 0.5, %v1066_v37  ;;  %v1075_v45 = vmul.f32 %v1071_v39, %v1071_v39  ;;  %v1061_v5 = vadd.f32 %v1509_v38, %v1503_v32 }
 0x454   :  { %v1029_v40 = vpop.f32.mrf.mxu1  ;;  %v1062_v12 = vmul.f32 0.5, %v1058_v1 }
 0x455   :  { %v1068_v42 = vsub.f32 %v1009_v33, %v1029_v40  ;;  %v1073_v48 = vmul.f32 0.5, %v1069_v41  ;;  %v1074_v52 = vmul.f32 %v1070_v43, %v1070_v43  ;;  %v1060_v13 = vadd.f32 %v1029_v40, %v1009_v33 }
 0x456   :  { %v1512_v44 = vpop.f32.mrf.mxu1  ;;  %v1065_v16 = vmul.f32 0.5, %v1061_v5 }
 0x457   :  { %v1079_v46 = vmul.f32 %v1512_v44, %v1512_v44  ;;  %v1072_v49 = vmul.f32 0.5, %v1068_v42  ;;  %v1077_v57 = vmul.f32 %v1073_v48, %v1073_v48  ;;  %v1064_v24 = vmul.f32 0.5, %v1060_v13 }
 0x458   :  { %v1039_v47 = vpop.f32.mrf.mxu1 }
 0x459   :  { %v1083_v50 = vadd.f32 %v1079_v46, %v1075_v45  ;;  %v1078_v51 = vmul.f32 %v1039_v47, %v1039_v47  ;;  %v1076_v58 = vmul.f32 %v1072_v49, %v1072_v49 }
 0x45a   :  { %v1515_v53 = vpop.f32.mrf.mxu1 }
 0x45b   :  { %1519 = vrsqrt.f32 %v1083_v50  ;;  %v1082_v54 = vadd.f32 %v1078_v51, %v1074_v52  ;;  %v1081_v55 = vmul.f32 %v1515_v53, %v1515_v53  ;;  %vm1095_vm3 = vcmp.eq.f32.partialorder %v1083_v50, inf }
 0x45c   :  { %v1049_v56 = vpop.f32.mrf.mxu1  ;;  %v1098_v2 = vand.u32 2147483648, %v1083_v50  ;;  %vm1097_vm4 = vcmp.eq.f32.partialorder %v1083_v50, 0.0 }
 0x45d   :  { %v1080_v59 = vmul.f32 %v1049_v56, %v1049_v56  ;;  %1521 = vrsqrt.f32 %v1082_v54  ;;  %v1085_v60 = vadd.f32 %v1081_v55, %v1077_v57  ;;  %vm1088_vm5 = vcmp.eq.f32.partialorder %v1082_v54, inf }
 0x45e   :  { %v1091_v9 = vand.u32 2147483648, %v1082_v54  ;;  %vm1090_vm6 = vcmp.eq.f32.partialorder %v1082_v54, 0.0 }
 0x45f   :  { %v1084_v61 = vadd.f32 %v1080_v59, %v1076_v58  ;;  %1523 = vrsqrt.f32 %v1085_v60  ;;  %vm1109_vm7 = vcmp.eq.f32.partialorder %v1085_v60, inf  ;;  %v1112_v19 = vand.u32 2147483648, %v1085_v60 }
 0x460   :  { %vm1111_vm8 = vcmp.eq.f32.partialorder %v1085_v60, 0.0 }
 0x461   :  { %1525 = vrsqrt.f32 %v1084_v61  ;;  %vm1102_vm9 = vcmp.eq.f32.partialorder %v1084_v61, inf  ;;  %v1105_v23 = vand.u32 2147483648, %v1084_v61  ;;  %vm1104_vm10 = vcmp.eq.f32.partialorder %v1084_v61, 0.0 }
 0x468   :  { %v1520_v63 = vpop.eup %1519 }
 0x469   :  { %v1094_v0 = vmul.f32 %v1520_v63, %v1083_v50 }
 0x46a   :  { %v1522_v3 = vpop.eup %1521 }
 0x46b   :  { %v1096_v6 = vsel %vm1095_vm3, %v1083_v50, %v1094_v0  ;;  %v1087_v7 = vmul.f32 %v1522_v3, %v1082_v54 }
 0x46c   :  { %v1099_v8 = vsel %vm1097_vm4, %v1098_v2, %v1096_v6  ;;  %v1524_v11 = vpop.eup %1523 }
 0x46d   :  { %v1115_v10 = vsub.f32 %v1063_v4, %v1099_v8  ;;  %v1089_v14 = vsel %vm1088_vm5, %v1082_v54, %v1087_v7  ;;  %v1108_v17 = vmul.f32 %v1524_v11, %v1085_v60 }
 0x46e   :  { %v1526_v15 = vpop.eup %1525  ;;  %v1092_v18 = vsel %vm1090_vm6, %v1091_v9, %v1089_v14 }
 0x46f   :  { %1119 = vst.msk [vmem:[#allocation2 + $0x8] sm:$0xff] %vm611_vm1, %v1115_v10  ;;  %v1101_v20 = vmul.f32 %v1526_v15, %v1084_v61  ;;  %v1114_v21 = vsub.f32 %v1062_v12, %v1092_v18  ;;  %v1110_v22 = vsel %vm1109_vm7, %v1085_v60, %v1108_v17 }
 0x470   :  { %v1113_v26 = vsel %vm1111_vm8, %v1112_v19, %v1110_v22 }
 0x471   :  { %v1103_v25 = vsel %vm1102_vm9, %v1084_v61, %v1101_v20  ;;  %1118 = vst.msk [vmem:[#allocation2] sm:$0xff] %vm611_vm1, %v1114_v21  ;;  %v1117_v28 = vsub.f32 %v1065_v16, %v1113_v26 }
 0x472   :  { %v1106_v27 = vsel %vm1104_vm10, %v1105_v23, %v1103_v25 }
 0x473   :  { %v1116_v29 = vsub.f32 %v1064_v24, %v1106_v27  ;;  %1121 = vst.msk [vmem:[#allocation2 + $0x18] sm:$0xff] %vm611_vm1, %v1117_v28 }
 0x475   :  { %1120 = vst.msk [vmem:[#allocation2 + $0x10] sm:$0xff] %vm611_vm1, %v1116_v29 }
 0x476   :  { %1538 = shalt.err (!%p1535_p4)
}
 0x477   :  { %s1550_s19 = smov 128   ;;  %s1551_s5 = smov 8  }
 0x478   :  { %1133 = dma.vmem_to_hbm [thread:$0]  %s1128_s8, 512, %s2064_s9, [#allocation3], %s1550_s19, %s1550_s19, %s1551_s5  }
 0x479   :  { %1547 = dma.done.wait [#allocation3], 512  }
 0x47a   :  { %1548 = vsyncadd [#allocation3], 4294966784 }
 0x47b   :  { %1137 = vsyncpa [#allocation3], 1 }

</bundles_post_ra>
